<compile_context>
chip_gen: v7x
topology: tpu7x:2x2x1
jax: 0.10.0
libtpu: 0.0.40
codegen_flags: <defaults>
</compile_context>

<pallas_src>
import functools

import jax
import jax.numpy as jnp
import numpy as np
from jax.experimental import pallas as pl
from jax.experimental.pallas import tpu as pltpu

_EPS = 1e-6
_QUANTILES = (0.25, 0.5, 0.75)
_NUM_FEATURE_GROUPS = 9  # 4 moments + 3 quantiles + 2 crossing rates, each D wide


def _stat_feature_kernel(x_ref, q_ref, rmean_ref, rstat_ref, w_ref, b_ref, out_ref):
    # x_ref:     (Bt, S*D)  raw input tile, lane-dense: x_flat[b, s*D + d] = x[b, s, d]
    # q_ref:     (Bt, 3*D)  pre-interpolated quantiles [q25 | q50 | q75]
    # rmean_ref: (S*D, D)   0/1 selector: column d sums lanes {s*D + d}       (constant)
    # rstat_ref: (3*S*D + 2*(S-1)*D, 5*D) block-diagonal 0/1 selector         (constant)
    # w_ref:     (OUT, 9*D) fusion weight in PyTorch layout (no transpose needed)
    # b_ref:     (1, OUT)   fusion bias
    # out_ref:   (Bt, OUT)
    x = x_ref[...].astype(jnp.float32)                  # (Bt, S*D) lane-dense
    d = q_ref.shape[1] // 3
    sd = x.shape[1]
    s = sd // d
    inv_s = 1.0 / s
    inv_s1 = 1.0 / (s - 1)

    # ---- mean over the sequence axis: one full-depth (K = S*D) MXU contraction ----
    mean = jnp.dot(x, rmean_ref[...], preferred_element_type=jnp.float32) * inv_s  # (Bt, D)
    # Broadcast back to the lane-dense layout (pure lane concat; no sublane relayout).
    mean_flat = jnp.concatenate([mean] * s, axis=-1)                                # (Bt, S*D)

    # ---- centered powers (full-lane VPU passes) ----
    xc = x - mean_flat
    xc2 = xc * xc
    xc3 = xc2 * xc
    xc4 = xc2 * xc2

    # ---- crossing indicators: the "next" sample along S is a lane offset of D ----
    # (xc is reused for the mean-crossing test; the 0/1 indicators are exact)
    nz = sd - d
    zc = (x[:, :nz] * x[:, d:] < 0.0).astype(jnp.float32)       # (Bt, (S-1)*D)
    mc = (xc[:, :nz] * xc[:, d:] < 0.0).astype(jnp.float32)     # (Bt, (S-1)*D)

    # ---- one fused sequence reduction for var / m3 / m4 / zero-x / mean-x ----
    packed = jnp.concatenate([xc2, xc3, xc4, zc, mc], axis=-1)  # (Bt, 3*S*D + 2*(S-1)*D)
    sums = jnp.dot(packed, rstat_ref[...], preferred_element_type=jnp.float32)  # (Bt, 5*D)
    var = sums[:, 0 * d:1 * d] * inv_s
    m3 = sums[:, 1 * d:2 * d] * inv_s
    m4 = sums[:, 2 * d:3 * d] * inv_s
    zcr = sums[:, 3 * d:4 * d] * inv_s1
    mcr = sums[:, 4 * d:5 * d] * inv_s1

    std = jnp.sqrt(var + _EPS)
    skew = m3 / (std * std * std + _EPS)          # exact division (parity > approx EUP)
    v_eps = var + _EPS
    kurt = m4 / (v_eps * v_eps) - 3.0

    # ---- fusion: Linear + ReLU  (Dropout(0.1) is identity at inference) ----
    # Feature order matches ModuleDict iteration: moments, quantiles, crossings.
    feats = jnp.concatenate(
        [mean, std, skew, kurt, q_ref[...].astype(jnp.float32), zcr, mcr],
        axis=-1)                                                 # (Bt, 9*D)
    # Single matmul, bf16 operands (single-pass MXU), f32 accumulation.  W stays in
    # PyTorch (OUT, 9*D) layout and is contracted over its 2nd axis (NT dims).
    y = jax.lax.dot_general(
        feats.astype(jnp.bfloat16), w_ref[...].astype(jnp.bfloat16),
        dimension_numbers=(((1,), (1,)), ((), ())),
        preferred_element_type=jnp.float32)
    y = y + b_ref[...]
    out_ref[...] = jnp.maximum(y, 0.0).astype(out_ref.dtype)


def _round_up(x, m):
    return ((x + m - 1) // m) * m


def _vmem_budget_bytes():
    """~75% of this generation's per-core VMEM (fallback 48 MiB, safe on v7x)."""
    try:
        info = pltpu.get_tpu_info()
        cap = int(getattr(info, "vmem_capacity_bytes", 64 << 20))
    except Exception:
        cap = 64 << 20
    return (cap * 3) // 4


def _has_two_tensorcores():
    """True on chips whose 2 TensorCores share work only across parallel grid steps."""
    try:
        kind = jax.devices()[0].device_kind.lower()
    except Exception:
        return False
    return any(tag in kind for tag in ("v7", "tpu7", "v4", "v5p", "v3"))


def _pick_batch_tile(B, S, D, out_dim, *, two_cores, vmem_budget):
    # Per batch row (f32): double-buffered x / quantile / output tiles plus the live
    # lane-dense temporaries (x, mean_flat, xc, xc2, xc3, xc4, zc, mc, packed, feats).
    per_row = 4 * (2 * (S * D + 3 * D + out_dim) + 12 * S * D + 12 * D)
    bt = max(8, vmem_budget // max(per_row, 1))
    if two_cores:
        # Keep >= 2 parallel grid steps so both TensorCores get work (v7x / megacore).
        bt = min(bt, max(8, _round_up(B, 16) // 2))
    bt = min(bt, _round_up(B, 8))
    return max(8, (bt // 8) * 8)


def statistical_feature_extractor(x, w, b, *, batch_tile=None):
    """x: (B, S, D) f32; w: (OUT, 9*D) f32 (PyTorch Linear weight); b: (OUT,) f32."""
    B, S, D = x.shape
    out_dim = w.shape[0]
    assert w.shape[1] == _NUM_FEATURE_GROUPS * D
    assert S >= 2

    # TODO(synk): sort has no TPU Pallas primitive; the order statistics come from a
    # plain-JAX sort along S, and only the 3 interpolated quantile rows are shipped
    # to the kernel as a lane-flat (B, 3*D) slab.
    x_sorted = jnp.sort(x, axis=1)
    qrows = []
    for q in _QUANTILES:
        pos = q * (S - 1)
        lo, hi = int(np.floor(pos)), int(np.ceil(pos))
        frac = float(pos - lo)
        qrows.append(x_sorted[:, lo, :] * (1.0 - frac) + x_sorted[:, hi, :] * frac)
    quants = jnp.concatenate(qrows, axis=-1)                     # (B, 3*D)

    # Lane-dense input layout: (B, S, D) -> (B, S*D) is a free row-major reshape.
    x_flat = x.reshape(B, S * D)

    # Constant 0/1 selector matrices (numpy -> jit-time constants, fetched once).
    # Column d of `sel` sums lanes {s*D + d}; `rstat` is block-diagonal over the 5
    # groups (var/m3/m4 use all S rows; the crossing groups use the first S-1 rows,
    # which also masks the lane-offset wrap).
    sel = np.zeros((S * D, D), np.float32)
    sel[np.arange(S * D), np.arange(S * D) % D] = 1.0
    sel_cross = sel[: (S - 1) * D, :]
    stat_rows = 3 * S * D + 2 * (S - 1) * D
    rstat = np.zeros((stat_rows, 5 * D), np.float32)
    for g in range(3):
        rstat[g * S * D:(g + 1) * S * D, g * D:(g + 1) * D] = sel
    off = 3 * S * D
    for g in range(2):
        rstat[off + g * (S - 1) * D: off + (g + 1) * (S - 1) * D,
              (3 + g) * D:(4 + g) * D] = sel_cross

    two_cores = _has_two_tensorcores()
    vmem_budget = _vmem_budget_bytes()
    if batch_tile is None:
        bt = _pick_batch_tile(B, S, D, out_dim,
                              two_cores=two_cores, vmem_budget=vmem_budget)
    else:
        bt = max(8, (int(batch_tile) // 8) * 8)
        bt = min(bt, _round_up(B, 8))

    # Pad the batch so the grid always divides it (no whole-problem fallback tile).
    B_pad = _round_up(B, bt)
    if B_pad != B:
        x_flat = jnp.pad(x_flat, ((0, B_pad - B), (0, 0)))
        quants = jnp.pad(quants, ((0, B_pad - B), (0, 0)))
    grid = (B_pad // bt,)

    b2d = b.reshape(1, out_dim)

    flops = int(B_pad * (2 * S * D * D                              # mean contraction
                         + 2 * stat_rows * 5 * D                    # fused stat contraction
                         + 2 * _NUM_FEATURE_GROUPS * D * out_dim    # fusion matmul
                         + 14 * S * D))                             # elementwise passes
    bytes_accessed = int(4 * (B_pad * (S * D + 3 * D + out_dim)
                              + S * D * D + stat_rows * 5 * D
                              + out_dim * _NUM_FEATURE_GROUPS * D + out_dim))
    transcendentals = int(3 * B_pad * D)

    out = pl.pallas_call(
        _stat_feature_kernel,
        out_shape=jax.ShapeDtypeStruct((B_pad, out_dim), jnp.float32),
        grid=grid,
        in_specs=[
            pl.BlockSpec((bt, S * D), lambda i: (i, 0)),
            pl.BlockSpec((bt, 3 * D), lambda i: (i, 0)),
            pl.BlockSpec((S * D, D), lambda i: (0, 0)),
            pl.BlockSpec((stat_rows, 5 * D), lambda i: (0, 0)),
            pl.BlockSpec((out_dim, _NUM_FEATURE_GROUPS * D), lambda i: (0, 0)),
            pl.BlockSpec((1, out_dim), lambda i: (0, 0)),
        ],
        out_specs=pl.BlockSpec((bt, out_dim), lambda i: (i, 0)),
        compiler_params=pltpu.CompilerParams(
            dimension_semantics=("parallel",),
            vmem_limit_bytes=int(vmem_budget)),
        cost_estimate=pl.CostEstimate(
            flops=flops, transcendentals=transcendentals,
            bytes_accessed=bytes_accessed),
    )(x_flat, quants, jnp.asarray(sel), jnp.asarray(rstat), w, b2d)

    return out[:B] if B_pad != B else out


def _reference(x, w, b):
    """Plain-JAX reference mirroring the module's forward (eval mode)."""
    B, S, D = x.shape
    mean = jnp.mean(x, axis=1)
    xc = x - mean[:, None, :]
    var = jnp.mean(xc * xc, axis=1)
    std = jnp.sqrt(var + _EPS)
    skew = jnp.mean(xc ** 3, axis=1) / (std ** 3 + _EPS)
    kurt = jnp.mean(xc ** 4, axis=1) / ((var + _EPS) ** 2) - 3.0
    xs = jnp.sort(x, axis=1)
    qfeats = []
    for q in _QUANTILES:
        pos = q * (S - 1)
        lo, hi = int(np.floor(pos)), int(np.ceil(pos))
        frac = float(pos - lo)
        qfeats.append(xs[:, lo, :] * (1.0 - frac) + xs[:, hi, :] * frac)
    zcr = jnp.mean((x[:, :-1, :] * x[:, 1:, :] < 0.0).astype(jnp.float32), axis=1)
    mcr = jnp.mean((xc[:, :-1, :] * xc[:, 1:, :] < 0.0).astype(jnp.float32), axis=1)
    combined = jnp.concatenate([mean, std, skew, kurt] + qfeats + [zcr, mcr], axis=-1)
    return jnp.maximum(combined @ w.T + b[None, :], 0.0)


if __name__ == "__main__":
    # batch=16, seq=16, input_dim=8, output_dim=128
    # (S*D = 128 -> lane-dense input slab; OUT = 128 -> lane-dense output stores)
    B, S, D, OUT = 16, 16, 8, 128
    key = jax.random.PRNGKey(0)
    kx, kw, kb = jax.random.split(key, 3)

    x = jax.random.normal(kx, (B, S, D), dtype=jnp.float32)

    total_features = _NUM_FEATURE_GROUPS * D       # 4D moments + 3D quantiles + 2D crossings
    bound = 1.0 / np.sqrt(total_features)           # PyTorch Linear default init range
    w = jax.random.uniform(kw, (OUT, total_features), minval=-bound, maxval=bound,
                           dtype=jnp.float32)
    b = jax.random.uniform(kb, (OUT,), minval=-bound, maxval=bound, dtype=jnp.float32)

    run = jax.jit(functools.partial(statistical_feature_extractor, batch_tile=8))
    out = jax.block_until_ready(run(x, w, b))        # grid=(2,), exercises the pipeline
    ref = jax.block_until_ready(_reference(x, w, b))
    np.testing.assert_allclose(np.asarray(out), np.asarray(ref), rtol=1e-2, atol=1e-2)
    assert out.shape == (B, OUT)
    print("KERNEL_OK")
</pallas_src>

<mosaic_0001>
module attributes {stable_mosaic.version = 11 : i64} {
  func.func @_stat_feature_kernel(%arg0: i32, %arg1: memref<8x128xf32, #tpu.memory_space<vmem>>, %arg2: memref<8x24xf32, #tpu.memory_space<vmem>>, %arg3: memref<128x8xf32, #tpu.memory_space<vmem>>, %arg4: memref<624x40xf32, #tpu.memory_space<vmem>>, %arg5: memref<128x72xf32, #tpu.memory_space<vmem>>, %arg6: memref<1x128xf32, #tpu.memory_space<vmem>>, %arg7: memref<8x128xf32, #tpu.memory_space<vmem>>) attributes {dimension_semantics = [#tpu.dimension_semantics<parallel>], iteration_bounds = array<i64: 2>, scalar_prefetch = 0 : i64, scratch_operands = 0 : i64, tpu.core_type = #tpu.core_type<tc>, window_params = [{transform_indices = @transform_0, window_bounds = array<i64: 8, 128>}, {transform_indices = @transform_1, window_bounds = array<i64: 8, 24>}, {pipeline_mode = #tpu.pipeline_mode<synchronous>, transform_indices = @transform_2, window_bounds = array<i64: 128, 8>}, {pipeline_mode = #tpu.pipeline_mode<synchronous>, transform_indices = @transform_3, window_bounds = array<i64: 624, 40>}, {pipeline_mode = #tpu.pipeline_mode<synchronous>, transform_indices = @transform_4, window_bounds = array<i64: 128, 72>}, {pipeline_mode = #tpu.pipeline_mode<synchronous>, transform_indices = @transform_5, window_bounds = array<i64: 1, 128>}, {transform_indices = @transform_6, window_bounds = array<i64: 8, 128>}]} {
    %c0 = arith.constant 0 : index
    %c0_0 = arith.constant 0 : index
    %0 = vector.load %arg1[%c0, %c0_0] : memref<8x128xf32, #tpu.memory_space<vmem>>, vector<8x128xf32>
    %c0_1 = arith.constant 0 : index
    %c0_2 = arith.constant 0 : index
    %1 = vector.load %arg3[%c0_1, %c0_2] : memref<128x8xf32, #tpu.memory_space<vmem>>, vector<128x8xf32>
    %cst = arith.constant dense<0.000000e+00> : vector<8x8xf32>
    %2 = tpu.matmul %0, %1, %cst {dimension_numbers = #tpu.dot_dimension_numbers<[1], [0], [0], [1], [0, 0, 1, 1], [], []>} : vector<8x128xf32>, vector<128x8xf32>, vector<8x8xf32> -> vector<8x8xf32>
    %cst_3 = arith.constant 6.250000e-02 : f32
    %3 = vector.broadcast %cst_3 : f32 to vector<8x8xf32>
    %4 = arith.mulf %2, %3 : vector<8x8xf32>
    %5 = tpu.concatenate %4, %4, %4, %4, %4, %4, %4, %4, %4, %4, %4, %4, %4, %4, %4, %4 in 1 : vector<8x8xf32>, vector<8x8xf32>, vector<8x8xf32>, vector<8x8xf32>, vector<8x8xf32>, vector<8x8xf32>, vector<8x8xf32>, vector<8x8xf32>, vector<8x8xf32>, vector<8x8xf32>, vector<8x8xf32>, vector<8x8xf32>, vector<8x8xf32>, vector<8x8xf32>, vector<8x8xf32>, vector<8x8xf32> -> vector<8x128xf32>
    %6 = arith.subf %0, %5 : vector<8x128xf32>
    %7 = arith.mulf %6, %6 : vector<8x128xf32>
    %8 = arith.mulf %7, %6 : vector<8x128xf32>
    %9 = arith.mulf %7, %7 : vector<8x128xf32>
    %10 = vector.extract_strided_slice %0 {offsets = [0, 0], sizes = [8, 120], strides = [1, 1]} : vector<8x128xf32> to vector<8x120xf32>
    %11 = vector.extract_strided_slice %0 {offsets = [0, 8], sizes = [8, 120], strides = [1, 1]} : vector<8x128xf32> to vector<8x120xf32>
    %12 = arith.mulf %10, %11 : vector<8x120xf32>
    %cst_4 = arith.constant 0.000000e+00 : f32
    %13 = vector.broadcast %cst_4 : f32 to vector<8x120xf32>
    %14 = arith.cmpf olt, %12, %13 : vector<8x120xf32>
    %15 = arith.extui %14 : vector<8x120xi1> to vector<8x120xi32>
    %16 = arith.sitofp %15 : vector<8x120xi32> to vector<8x120xf32>
    %17 = vector.extract_strided_slice %6 {offsets = [0, 0], sizes = [8, 120], strides = [1, 1]} : vector<8x128xf32> to vector<8x120xf32>
    %18 = vector.extract_strided_slice %6 {offsets = [0, 8], sizes = [8, 120], strides = [1, 1]} : vector<8x128xf32> to vector<8x120xf32>
    %19 = arith.mulf %17, %18 : vector<8x120xf32>
    %cst_5 = arith.constant 0.000000e+00 : f32
    %20 = vector.broadcast %cst_5 : f32 to vector<8x120xf32>
    %21 = arith.cmpf olt, %19, %20 : vector<8x120xf32>
    %22 = arith.extui %21 : vector<8x120xi1> to vector<8x120xi32>
    %23 = arith.sitofp %22 : vector<8x120xi32> to vector<8x120xf32>
    %24 = tpu.concatenate %7, %8, %9, %16, %23 in 1 : vector<8x128xf32>, vector<8x128xf32>, vector<8x128xf32>, vector<8x120xf32>, vector<8x120xf32> -> vector<8x624xf32>
    %c0_6 = arith.constant 0 : index
    %c0_7 = arith.constant 0 : index
    %25 = vector.load %arg4[%c0_6, %c0_7] : memref<624x40xf32, #tpu.memory_space<vmem>>, vector<624x40xf32>
    %cst_8 = arith.constant dense<0.000000e+00> : vector<8x40xf32>
    %26 = tpu.matmul %24, %25, %cst_8 {dimension_numbers = #tpu.dot_dimension_numbers<[1], [0], [0], [1], [0, 0, 1, 1], [], []>} : vector<8x624xf32>, vector<624x40xf32>, vector<8x40xf32> -> vector<8x40xf32>
    %27 = vector.extract_strided_slice %26 {offsets = [0, 0], sizes = [8, 8], strides = [1, 1]} : vector<8x40xf32> to vector<8x8xf32>
    %cst_9 = arith.constant 6.250000e-02 : f32
    %28 = vector.broadcast %cst_9 : f32 to vector<8x8xf32>
    %29 = arith.mulf %27, %28 : vector<8x8xf32>
    %30 = vector.extract_strided_slice %26 {offsets = [0, 8], sizes = [8, 8], strides = [1, 1]} : vector<8x40xf32> to vector<8x8xf32>
    %cst_10 = arith.constant 6.250000e-02 : f32
    %31 = vector.broadcast %cst_10 : f32 to vector<8x8xf32>
    %32 = arith.mulf %30, %31 : vector<8x8xf32>
    %33 = vector.extract_strided_slice %26 {offsets = [0, 16], sizes = [8, 8], strides = [1, 1]} : vector<8x40xf32> to vector<8x8xf32>
    %cst_11 = arith.constant 6.250000e-02 : f32
    %34 = vector.broadcast %cst_11 : f32 to vector<8x8xf32>
    %35 = arith.mulf %33, %34 : vector<8x8xf32>
    %36 = vector.extract_strided_slice %26 {offsets = [0, 24], sizes = [8, 8], strides = [1, 1]} : vector<8x40xf32> to vector<8x8xf32>
    %cst_12 = arith.constant 0.0666666701 : f32
    %37 = vector.broadcast %cst_12 : f32 to vector<8x8xf32>
    %38 = arith.mulf %36, %37 : vector<8x8xf32>
    %39 = vector.extract_strided_slice %26 {offsets = [0, 32], sizes = [8, 8], strides = [1, 1]} : vector<8x40xf32> to vector<8x8xf32>
    %cst_13 = arith.constant 0.0666666701 : f32
    %40 = vector.broadcast %cst_13 : f32 to vector<8x8xf32>
    %41 = arith.mulf %39, %40 : vector<8x8xf32>
    %cst_14 = arith.constant 9.99999997E-7 : f32
    %42 = vector.broadcast %cst_14 : f32 to vector<8x8xf32>
    %43 = arith.addf %29, %42 : vector<8x8xf32>
    %44 = math.sqrt %43 : vector<8x8xf32>
    %45 = arith.mulf %44, %44 : vector<8x8xf32>
    %46 = arith.mulf %45, %44 : vector<8x8xf32>
    %cst_15 = arith.constant 9.99999997E-7 : f32
    %47 = vector.broadcast %cst_15 : f32 to vector<8x8xf32>
    %48 = arith.addf %46, %47 : vector<8x8xf32>
    %49 = arith.divf %32, %48 : vector<8x8xf32>
    %cst_16 = arith.constant 9.99999997E-7 : f32
    %50 = vector.broadcast %cst_16 : f32 to vector<8x8xf32>
    %51 = arith.addf %29, %50 : vector<8x8xf32>
    %52 = arith.mulf %51, %51 : vector<8x8xf32>
    %53 = arith.divf %35, %52 : vector<8x8xf32>
    %cst_17 = arith.constant 3.000000e+00 : f32
    %54 = vector.broadcast %cst_17 : f32 to vector<8x8xf32>
    %55 = arith.subf %53, %54 : vector<8x8xf32>
    %c0_18 = arith.constant 0 : index
    %c0_19 = arith.constant 0 : index
    %56 = vector.load %arg2[%c0_18, %c0_19] : memref<8x24xf32, #tpu.memory_space<vmem>>, vector<8x24xf32>
    %57 = tpu.concatenate %4, %44, %49, %55, %56, %38, %41 in 1 : vector<8x8xf32>, vector<8x8xf32>, vector<8x8xf32>, vector<8x8xf32>, vector<8x24xf32>, vector<8x8xf32>, vector<8x8xf32> -> vector<8x72xf32>
    %58 = arith.truncf %57 : vector<8x72xf32> to vector<8x72xbf16>
    %c0_20 = arith.constant 0 : index
    %c0_21 = arith.constant 0 : index
    %59 = vector.load %arg5[%c0_20, %c0_21] : memref<128x72xf32, #tpu.memory_space<vmem>>, vector<128x72xf32>
    %60 = arith.truncf %59 : vector<128x72xf32> to vector<128x72xbf16>
    %cst_22 = arith.constant dense<0.000000e+00> : vector<8x128xf32>
    %61 = tpu.matmul %58, %60, %cst_22 {dimension_numbers = #tpu.dot_dimension_numbers<[1], [1], [0], [0], [0, 0, 1, 0], [], []>} : vector<8x72xbf16>, vector<128x72xbf16>, vector<8x128xf32> -> vector<8x128xf32>
    %c0_23 = arith.constant 0 : index
    %c0_24 = arith.constant 0 : index
    %62 = vector.load %arg6[%c0_23, %c0_24] : memref<1x128xf32, #tpu.memory_space<vmem>>, vector<1x128xf32>
    %63 = vector.broadcast %62 : vector<1x128xf32> to vector<8x128xf32>
    %64 = arith.addf %61, %63 : vector<8x128xf32>
    %cst_25 = arith.constant 0.000000e+00 : f32
    %65 = vector.broadcast %cst_25 : f32 to vector<8x128xf32>
    %66 = arith.maximumf %64, %65 : vector<8x128xf32>
    %c0_26 = arith.constant 0 : index
    %c0_27 = arith.constant 0 : index
    %67 = vector.load %arg7[%c0_26, %c0_27] : memref<8x128xf32, #tpu.memory_space<vmem>>, vector<8x128xf32>
    tpu.vector_store %arg7[%c0_26, %c0_27], %66 {strides = array<i32>} : memref<8x128xf32, #tpu.memory_space<vmem>>, vector<8x128xf32>,
    return
  }
  func.func @transform_0(%arg0: i32) -> (i32, i32) {
    %c0_i32 = arith.constant 0 : i32
    %c0_i32_0 = arith.constant 0 : i32
    return %arg0, %c0_i32 : i32, i32
  }
  func.func @transform_1(%arg0: i32) -> (i32, i32) {
    %c0_i32 = arith.constant 0 : i32
    %c0_i32_0 = arith.constant 0 : i32
    return %arg0, %c0_i32 : i32, i32
  }
  func.func @transform_2(%arg0: i32) -> (i32, i32) {
    %c0_i32 = arith.constant 0 : i32
    %c0_i32_0 = arith.constant 0 : i32
    %c0_i32_1 = arith.constant 0 : i32
    return %c0_i32, %c0_i32_0 : i32, i32
  }
  func.func @transform_3(%arg0: i32) -> (i32, i32) {
    %c0_i32 = arith.constant 0 : i32
    %c0_i32_0 = arith.constant 0 : i32
    %c0_i32_1 = arith.constant 0 : i32
    return %c0_i32, %c0_i32_0 : i32, i32
  }
  func.func @transform_4(%arg0: i32) -> (i32, i32) {
    %c0_i32 = arith.constant 0 : i32
    %c0_i32_0 = arith.constant 0 : i32
    %c0_i32_1 = arith.constant 0 : i32
    return %c0_i32, %c0_i32_0 : i32, i32
  }
  func.func @transform_5(%arg0: i32) -> (i32, i32) {
    %c0_i32 = arith.constant 0 : i32
    %c0_i32_0 = arith.constant 0 : i32
    %c0_i32_1 = arith.constant 0 : i32
    return %c0_i32, %c0_i32_0 : i32, i32
  }
  func.func @transform_6(%arg0: i32) -> (i32, i32) {
    %c0_i32 = arith.constant 0 : i32
    %c0_i32_0 = arith.constant 0 : i32
    return %arg0, %c0_i32 : i32, i32
  }
}

</mosaic_0001>

<bundles_post_ra>
// kernel: statistical_feature_extractor.1
= control target key start
LH: loop header
LB: loop body
LE: loop exit
PB: predicated region body
PF: predicated region fallthrough
CT: control target
= control target key end

     0   :  { %11 = vsyncpa [#allocation3], 0  ;;  %s2063_s0 = inlined_call_operand.vmem [shape: f32[16,128], index: 0, kind: input, shape index: {}]   ;;  %s2064_s1 = inlined_call_operand.vmem [shape: f32[16,24], index: 1, kind: input, shape index: {}]   ;;  %s2065_s2 = inlined_call_operand.vmem [shape: f32[128,8], index: 2, kind: input, shape index: {}]   ;;  %s2066_s3 = inlined_call_operand.vmem [shape: f32[624,40], index: 3, kind: input, shape index: {}]   ;;  %s2067_s4 = inlined_call_operand.vmem [shape: f32[128,72], index: 4, kind: input, shape index: {}]   ;;  %s2068_s5 = inlined_call_operand.vmem [shape: f32[1,128], index: 5, kind: input, shape index: {}]   ;;  %s2069_s6 = inlined_call_operand.hbm [shape: f32[16,128], index: 6, kind: output, shape index: {}]  }
   0x1   :  { %13 = vsyncpa [#allocation3 + $0x1], 0  ;;  %s1498_s21 = smov 0   ;;  %s1500_s22 = smov 0  }
   0x2   :  { %s1502_s23 = smov 0   ;;  %s1504_s24 = smov 0  }
   0x3 LB: > { %s1519_s25 = sadd.s32 4294967295, %s1442_s24   ;;  %s984_s26 = sadd.s32 4294967294, %s1442_s24   ;;  %s1442_s24 = sphi %s1504_s24, %s2077_s24   ;;  %s1438_s23 = sphi %s1502_s23, %s2076_s23   ;;  %s1434_s22 = sphi %s1500_s22, %s2075_s22   ;;  %s1430_s21 = sphi %s1498_s21, %s2074_s21  }
   0x4   : > { %s1523_s27 = sadd.s32 1, %s1442_s24   ;;  %s162_s28 = sadd.s32 1, %s1438_s23 }
   0x5   : > { %s159_s29 = ssub.s32 %s1442_s24, %s1523_s27  ;;  %p172_p0 = scmp.ne.s32.totalorder %s1438_s23, %s1434_s22 }
   0x6   : > { %p160_p1 = scmp.eq.s32.totalorder %s159_s29, 0  ;;  %p173_p2 = scmp.eq.s32.totalorder %s1519_s25, 1 }
   0x7   : > { %p178_p3 = scmp.ne.s32.totalorder %s1434_s22, %s1430_s21  ;;  %p179_p4 = scmp.eq.s32.totalorder %s984_s26, 1 }
   0x8   : > { %s1534_s30 = scalar_select %p160_p1, %s1438_s23, %s162_s28  }
   0x9   : > { %p1536_p5 = por %p173_p2, %p172_p0  ;;  %p1540_p6 = por %p179_p4, %p178_p3 }
   0xa   : > { %p987_p7 = scmp.ge.s32.totalorder %s1442_s24, 1  ;;  %p223_p8 = scmp.lt.s32.totalorder %s1442_s24, 3 }
   0xc   : > { %p224_p9 = pnand %p987_p7, %p223_p8 }
   0xd   : > { %v266_v0 = vld [vmem:[%s2065_s2] sm:$0xff] (!%p224_p9)  ;;  %v267_v1 = vld [vmem:[%s2065_s2 + $0x8] sm:$0xff] (!%p224_p9)  ;;  %v268_v2 = vld [vmem:[%s2065_s2 + $0x10] sm:$0xff] (!%p224_p9)  ;;  %v1444_v3 = vmov (!%p224_p9), 0.0|0.0   ;;  %vm1445_vm0 = vmmov (!%p224_p9), 0   ;;  %v1446_v6 = vmov (!%p224_p9), 0.0  }
   0xe   : > { %227 = sbr.rel (%p224_p9) target bundleno = 1373 (0x55d), region = 44  ;;  %1198 = vmatprep.subr.bf16.mxu0 (!%p224_p9), %v1444_v3  ;;  %v1199_v4 = vpack.c.bf16 (!%p224_p9), %v267_v1, %v266_v0  ;;  %v269_v5 = vld [vmem:[%s2065_s2 + $0x18] sm:$0xff] (!%p224_p9)  ;;  %1144 = vmatprep.mubr.msk.f32.mxu0 (!%p224_p9), %vm1445_vm0, %v1446_v6  ;;  %v270_v8 = vld [vmem:[%s2065_s2 + $0x20] sm:$0xff] (!%p224_p9)  ;;  %v271_v9 = vld [vmem:[%s2065_s2 + $0x28] sm:$0xff] (!%p224_p9)  ;;  %p256_p10 = scmp.lt.s32.totalorder (!%p224_p9), %s1519_s25, 1  ;;  %vm399_vm1 = vcmask (!%p224_p9), 64512  }
   0xf   : > { %1286 = vmatprep.subr.bf16.mxu1 (!%p224_p9), %v1444_v3  ;;  %1175 = vmatprep.mubr.msk.f32.mxu1 (!%p224_p9), %vm1445_vm0, %v1446_v6  ;;  %v1202_v7 = vpack.c.bf16 (!%p224_p9), %v269_v5, %v268_v2  ;;  %v1205_v10 = vpack.c.bf16 (!%p224_p9), %v271_v9, %v270_v8  ;;  %v272_v11 = vld [vmem:[%s2065_s2 + $0x30] sm:$0xff] (!%p224_p9)  ;;  %v273_v12 = vld [vmem:[%s2065_s2 + $0x38] sm:$0xff] (!%p224_p9)  ;;  %v274_v14 = vld [vmem:[%s2065_s2 + $0x40] sm:$0xff] (!%p224_p9)  ;;  %s1447_s14 = smov (!%p224_p9), 24   ;;  %s2070_s10 = smov (!%p224_p9), 32   ;;  %vm401_vm2 = vcmask (!%p224_p9), 130048  }
  0x10   : > { %1200 = vmatpush3.bf16.msra.mxu0 (!%p224_p9), %v1199_v4  ;;  %v1208_v13 = vpack.c.bf16 (!%p224_p9), %v273_v12, %v272_v11  ;;  %v275_v15 = vld [vmem:[%s2065_s2 + $0x48] sm:$0xff] (!%p224_p9)  ;;  %v276_v17 = vld [vmem:[%s2065_s2 + $0x50] sm:$0xff] (!%p224_p9)  ;;  %v277_v18 = vld [vmem:[%s2065_s2 + $0x58] sm:$0xff] (!%p224_p9)  ;;  %s1450_s11 = smov (!%p224_p9), 16   ;;  %s1451_s29 = smov (!%p224_p9), 48   ;;  %vm403_vm3 = vcmask (!%p224_p9), 195584  }
  0x11   : > { %1201 = vmatprep.subr.bf16.mxu0 (!%p224_p9), %v1444_v3  ;;  %v1211_v16 = vpack.c.bf16 (!%p224_p9), %v275_v15, %v274_v14  ;;  %v1214_v19 = vpack.c.bf16 (!%p224_p9), %v277_v18, %v276_v17  ;;  %v278_v20 = vld [vmem:[%s2065_s2 + $0x60] sm:$0xff] (!%p224_p9)  ;;  %v279_v21 = vld [vmem:[%s2065_s2 + $0x68] sm:$0xff] (!%p224_p9)  ;;  %v280_v23 = vld [vmem:[%s2065_s2 + $0x70] sm:$0xff] (!%p224_p9)  ;;  %s1452_s9 = smov (!%p224_p9), 40   ;;  %s1459_s13 = smov (!%p224_p9), 112   ;;  %vm405_vm4 = vcmask (!%p224_p9), 261120  }
  0x12   : > { %v1217_v22 = vpack.c.bf16 (!%p224_p9), %v279_v21, %v278_v20  ;;  %v281_v24 = vld [vmem:[%s2065_s2 + $0x78] sm:$0xff] (!%p224_p9)  ;;  %v470_v27 = vld [vmem:[%s2066_s3 + $0x80] sm:$0xff] (!%p224_p9)  ;;  %v471_v28 = vld [vmem:[%s2066_s3 + $0x88] sm:$0xff] (!%p224_p9)  ;;  %s1461_s16 = smov (!%p224_p9), 120   ;;  %vm407_vm5 = vcmask (!%p224_p9), 326656   ;;  %vm409_vm6 = vcmask (!%p224_p9), 392192  }
  0x13   : > { %v1220_v25 = vpack.c.bf16 (!%p224_p9), %v281_v24, %v280_v23  ;;  %v1222_v29 = vpack.c.bf16 (!%p224_p9), %v471_v28, %v470_v27  ;;  %v454_v30 = vld [vmem:[%s2066_s3] sm:$0xff] (!%p224_p9)  ;;  %v455_v31 = vld [vmem:[%s2066_s3 + $0x8] sm:$0xff] (!%p224_p9)  ;;  %v472_v33 = vld [vmem:[%s2066_s3 + $0x90] sm:$0xff] (!%p224_p9)  ;;  %vm411_vm7 = vcmask (!%p224_p9), 457728   ;;  %vm413_vm8 = vcmask (!%p224_p9), 523264   ;;  %s1462_s19 = smov (!%p224_p9), [#allocation2]  }
  0x14   : > { %1203 = vmatpush3.bf16.msra.mxu0 (!%p224_p9), %v1202_v7  ;;  %v1224_v32 = vpack.c.bf16 (!%p224_p9), %v455_v31, %v454_v30  ;;  %v473_v34 = vld [vmem:[%s2066_s3 + $0x98] sm:$0xff] (!%p224_p9)  ;;  %v456_v36 = vld [vmem:[%s2066_s3 + $0x10] sm:$0xff] (!%p224_p9)  ;;  %v474_v39 = vld [vmem:[%s2066_s3 + $0xa0] sm:$0xff] (!%p224_p9)  ;;  %vm415_vm9 = vcmask (!%p224_p9), 588800   ;;  %vm417_vm10 = vcmask (!%p224_p9), 654336   ;;  %vm419_vm11 = vcmask (!%p224_p9), 719872  }
  0x15   : > { %1204 = vmatprep.subr.bf16.mxu0 %v1444_v3  ;;  %s1601_s28 = scalar_select %p256_p10, %s1519_s25, 1  ;;  %v1226_v35 = vpack.c.bf16 %v473_v34, %v472_v33  ;;  %v457_v37 = vld [vmem:[%s2066_s3 + $0x18] sm:$0xff]  ;;  %v475_v40 = vld [vmem:[%s2066_s3 + $0xa8] sm:$0xff]  ;;  %v458_v43 = vld [vmem:[%s2066_s3 + $0x20] sm:$0xff]  ;;  %vm421_vm12 = vcmask 785408   ;;  %vm423_vm13 = vcmask 850944  }
  0x16   : > { %v1228_v38 = vpack.c.bf16 %v457_v37, %v456_v36  ;;  %v1230_v42 = vpack.c.bf16 %v475_v40, %v474_v39  ;;  %v459_v44 = vld [vmem:[%s2066_s3 + $0x28] sm:$0xff]  ;;  %v476_v48 = vld [vmem:[%s2066_s3 + $0xb0] sm:$0xff]  ;;  %v477_v49 = vld [vmem:[%s2066_s3 + $0xb8] sm:$0xff]  ;;  %vm425_vm14 = vcmask 916480   ;;  %vm427_vm15 = vcmask 982016   ;;  %s1384_s20 = sshll.u32 %s1462_s19, 4  ;;  %s1385_s20 = int_to_ptr.vmem [resolvable:$false] %s1384_s20 }
  0x17   : > { %s989_s12 = sshll.u32 %s1601_s28, 3  ;;  %v1232_v47 = vpack.c.bf16 %v459_v44, %v458_v43  ;;  %v1234_v50 = vpack.c.bf16 %v477_v49, %v476_v48  ;;  %v460_v51 = vld [vmem:[%s2066_s3 + $0x30] sm:$0xff]  ;;  %v461_v52 = vld [vmem:[%s2066_s3 + $0x38] sm:$0xff]  ;;  %v478_v54 = vld [vmem:[%s2066_s3 + $0xc0] sm:$0xff]  ;;  %s253_s28 = sand.u32 1, %s1434_s22  }
  0x18   : > { %1206 = vmatpush3.bf16.msra.mxu0 %v1205_v10  ;;  %s259_s15 = scalar_lea.vmem %s2063_s0, %s989_s12  ;;  %v1236_v53 = vpack.c.bf16 %v461_v52, %v460_v51  ;;  %v479_v55 = vld [vmem:[%s2066_s3 + $0xc8] sm:$0xff]  ;;  %v462_v57 = vld [vmem:[%s2066_s3 + $0x40] sm:$0xff]  ;;  %v480_v60 = vld [vmem:[%s2066_s3 + $0xd0] sm:$0xff]  ;;  %s263_s26 = scalar_lea.vmem %s2064_s1, %s989_s12 }
  0x19   : > { %1207 = vmatprep.subr.bf16.mxu0 %v1444_v3  ;;  %v1617_v26 = vld [vmem:[%s259_s15] sm:$0xff]  ;;  %s1448_s15 = smov 8   ;;  %v1238_v56 = vpack.c.bf16 %v479_v55, %v478_v54  ;;  %v463_v58 = vld [vmem:[%s2066_s3 + $0x48] sm:$0xff]  ;;  %v481_v61 = vld [vmem:[%s2066_s3 + $0xd8] sm:$0xff]  ;;  %s988_s12 = sshll.u32 %s253_s28, 3 }
  0x1a   : > { %v1240_v59 = vpack.c.bf16 %v463_v58, %v462_v57  ;;  %v1242_v62 = vpack.c.bf16 %v481_v61, %v480_v60  ;;  %v464_v63 = vld [vmem:[%s2066_s3 + $0x50] sm:$0xff]  ;;  %v465_v0 = vld [vmem:[%s2066_s3 + $0x58] sm:$0xff]  ;;  %v482_v2 = vld [vmem:[%s2066_s3 + $0xe0] sm:$0xff]  ;;  %s900_s18 = scalar_lea.sflag [#allocation3], %s253_s28 }
  0x1b   : > { %v1244_v1 = vpack.c.bf16 %v465_v0, %v464_v63  ;;  %v483_v4 = vld [vmem:[%s2066_s3 + $0xe8] sm:$0xff]  ;;  %v466_v7 = vld [vmem:[%s2066_s3 + $0x60] sm:$0xff]  ;;  %v484_v10 = vld [vmem:[%s2066_s3 + $0xf0] sm:$0xff] }
  0x1c   : > { %1209 = vmatpush3.bf16.msra.mxu0 %v1208_v13  ;;  %v1246_v5 = vpack.c.bf16 %v483_v4, %v482_v2  ;;  %v467_v8 = vld [vmem:[%s2066_s3 + $0x68] sm:$0xff]  ;;  %v485_v11 = vld [vmem:[%s2066_s3 + $0xf8] sm:$0xff]  ;;  %v468_v13 = vld [vmem:[%s2066_s3 + $0x70] sm:$0xff] }
  0x1d   : > { %1210 = vmatprep.subr.bf16.mxu0 %v1444_v3  ;;  %v1248_v9 = vpack.c.bf16 %v467_v8, %v466_v7  ;;  %v1250_v12 = vpack.c.bf16 %v485_v11, %v484_v10  ;;  %v469_v14 = vld [vmem:[%s2066_s3 + $0x78] sm:$0xff]  ;;  %v502_v40 = vld [vmem:[%s2066_s3 + $0x180] sm:$0xff]  ;;  %v520_v51 = vld [vmem:[%s2066_s3 + $0x210] sm:$0xff] }
  0x1e   : > { %v1252_v15 = vpack.c.bf16 %v469_v14, %v468_v13  ;;  %v521_v52 = vld [vmem:[%s2066_s3 + $0x218] sm:$0xff]  ;;  %v523_v57 = vld [vmem:[%s2066_s3 + $0x228] sm:$0xff]  ;;  %v486_v60 = vld [vmem:[%s2066_s3 + $0x100] sm:$0xff] }
  0x1f   : > { %v487_v61 = vld [vmem:[%s2066_s3 + $0x108] sm:$0xff]  ;;  %v504_v0 = vld [vmem:[%s2066_s3 + $0x190] sm:$0xff]  ;;  %v489_v8 = vld [vmem:[%s2066_s3 + $0x118] sm:$0xff] }
  0x20   : > { %1212 = vmatpush3.bf16.msra.mxu0 %v1211_v16  ;;  %v1256_v4 = vpack.c.bf16 %v487_v61, %v486_v60  ;;  %v488_v7 = vld [vmem:[%s2066_s3 + $0x110] sm:$0xff]  ;;  %v507_v10 = vld [vmem:[%s2066_s3 + $0x1a8] sm:$0xff]  ;;  %v490_v13 = vld [vmem:[%s2066_s3 + $0x120] sm:$0xff] }
  0x21   : > { %1213 = vmatprep.subr.bf16.mxu0 %v1444_v3  ;;  %v1260_v11 = vpack.c.bf16 %v489_v8, %v488_v7  ;;  %v491_v14 = vld [vmem:[%s2066_s3 + $0x128] sm:$0xff] }
  0x24   : > { %1215 = vmatpush3.bf16.msra.mxu0 %v1214_v19 }
  0x25   : > { %1216 = vmatprep.subr.bf16.mxu0 %v1444_v3 }
  0x28   : > { %1218 = vmatpush3.bf16.msra.mxu0 %v1217_v22 }
  0x29   : > { %1219 = vmatprep.subr.bf16.mxu0 %v1444_v3 }
  0x2c   : > { %1221 = vmatpush3.bf16.msra.mxu0 %v1220_v25 }
  0x2d   : > { %1223 = vmatprep.subr.bf16.mxu0 %v1222_v29 }
  0x2f   : > { %1145 = vmatmul.mubr.f32.vlgmr.msra.gmra.mrb[0].mxu0 %v1617_v26 }
  0x30   : > { %1225 = vmatpush3.bf16.msra.mxu0 %v1224_v32 }
  0x31   : > { %1227 = vmatprep.subr.bf16.mxu0 %v1226_v35 }
  0x34   : > { %1229 = vmatpush3.bf16.msra.mxu0 %v1228_v38 }
  0x35   : > { %1231 = vmatprep.subr.bf16.mxu0 %v1230_v42 }
  0x38   : > { %1233 = vmatpush3.bf16.msra.mxu0 %v1232_v47  ;;  %v519_v47 = vld [vmem:[%s2066_s3 + $0x208] sm:$0xff] }
  0x39   : > { %1235 = vmatprep.subr.bf16.mxu0 %v1234_v50 }
  0x3c   : > { %1237 = vmatpush3.bf16.msra.mxu0 %v1236_v53  ;;  %v1290_v53 = vpack.c.bf16 %v521_v52, %v520_v51  ;;  %v517_v51 = vld [vmem:[%s2066_s3 + $0x1f8] sm:$0xff]  ;;  %v530_v52 = vld [vmem:[%s2066_s3 + $0x260] sm:$0xff] }
  0x3d   : > { %1239 = vmatprep.subr.bf16.mxu0 %v1238_v56  ;;  %v522_v56 = vld [vmem:[%s2066_s3 + $0x220] sm:$0xff] }
  0x40   : > { %1241 = vmatpush3.bf16.msra.mxu0 %v1240_v59 }
  0x41   : > { %1243 = vmatprep.subr.bf16.mxu0 %v1242_v62  ;;  %v1293_v62 = vpack.c.bf16 %v523_v57, %v522_v56  ;;  %v500_v57 = vld [vmem:[%s2066_s3 + $0x170] sm:$0xff] }
  0x44   : > { %1245 = vmatpush3.bf16.msra.mxu0 %v1244_v1  ;;  %v505_v1 = vld [vmem:[%s2066_s3 + $0x198] sm:$0xff] }
  0x45   : > { %1247 = vmatprep.subr.bf16.mxu0 %v1246_v5  ;;  %v1258_v5 = vpack.c.bf16 %v505_v1, %v504_v0 }
  0x48   : > { %1249 = vmatpush3.bf16.msra.mxu0 %v1248_v9  ;;  %v506_v9 = vld [vmem:[%s2066_s3 + $0x1a0] sm:$0xff] }
  0x49   : > { %1251 = vmatprep.subr.bf16.mxu0 %v1250_v12  ;;  %v1262_v12 = vpack.c.bf16 %v507_v10, %v506_v9 }
  0x4c   : > { %1253 = vmatpush3.bf16.msra.mxu0 %v1252_v15  ;;  %v1264_v15 = vpack.c.bf16 %v491_v14, %v490_v13 }
 0x102   : > { %v348_v41 = vpop.f32.mrb[0].mxu0 }
 0x103   : > { %v1656_v45 = vmul.f32 0.0625, %v348_v41  ;;  %v1146_v46 = vpop.f32.mrb[1].mxu0  ;;  %v503_v41 = vld [vmem:[%s2066_s3 + $0x188] sm:$0xff] }
 0x104   : > { %v1254_v44 = vpack.c.bf16 %v503_v41, %v502_v40  ;;  %v518_v46 = vld [vmem:[%s2066_s3 + $0x200] sm:$0xff]  ;;  %v528_v40 = vld [vmem:[%s2066_s3 + $0x250] sm:$0xff] }
 0x105   : > { %360 = vrot.lane.b32.xlu1 %v1656_v45, %s1447_s14  ;;  %354 = vrot.lane.b32.xlu0 %v1656_v45, %s1448_s15  ;;  %s1460_s14 = smov 104   ;;  %v1287_v50 = vpack.c.bf16 %v519_v47, %v518_v46  ;;  %v498_v47 = vld [vmem:[%s2066_s3 + $0x160] sm:$0xff] }
 0x106   : > { %1255 = vmatprep.subr.bf16.mxu0 %v1254_v44  ;;  %v515_v44 = vld [vmem:[%s2066_s3 + $0x1e8] sm:$0xff] }
 0x107   : > { %1288 = vmatpush3.bf16.msra.mxu1 %v1287_v50  ;;  %v516_v50 = vld [vmem:[%s2066_s3 + $0x1f0] sm:$0xff] }
 0x108   : > { %1289 = vmatprep.subr.bf16.mxu1 %v1444_v3 }
 0x109   : > { %363 = vrot.lane.b32.xlu1 %v1656_v45, %s2070_s10  ;;  %357 = vrot.lane.b32.xlu0 %v1656_v45, %s1450_s11 }
 0x10b   : > { %1291 = vmatpush3.bf16.msra.mxu1 %v1290_v53  ;;  %v531_v53 = vld [vmem:[%s2066_s3 + $0x268] sm:$0xff] }
 0x10c   : > { %1292 = vmatprep.subr.bf16.mxu1 %v1444_v3  ;;  %v1305_v56 = vpack.c.bf16 %v531_v53, %v530_v52  ;;  %v811_v52 = vld [vmem:[%s2067_s4 + $0x60] sm:$0xff]  ;;  %v812_v53 = vld [vmem:[%s2067_s4 + $0x68] sm:$0xff] }
 0x10d   : > { %369 = vrot.lane.b32.xlu1 %v1656_v45, %s1451_s29  ;;  %366 = vrot.lane.b32.xlu0 %v1656_v45, %s1452_s9  ;;  %s1453_s29 = smov 64   ;;  %s1454_s9 = smov 56  }
 0x10f   : > { %1294 = vmatpush3.bf16.msra.mxu1 %v1293_v62 }
 0x110   : > { %1295 = vmatprep.subr.bf16.mxu1 %v1444_v3 }
 0x111   : > { %375 = vrot.lane.b32.xlu1 %v1656_v45, %s1453_s29  ;;  %372 = vrot.lane.b32.xlu0 %v1656_v45, %s1454_s9  ;;  %s1455_s29 = smov 80   ;;  %s1456_s9 = smov 72  }
 0x115   : > { %381 = vrot.lane.b32.xlu1 %v1656_v45, %s1455_s29  ;;  %378 = vrot.lane.b32.xlu0 %v1656_v45, %s1456_s9  ;;  %s1457_s29 = smov 96   ;;  %s1458_s9 = smov 88  }
 0x119   : > { %387 = vrot.lane.b32.xlu1 %v1656_v45, %s1457_s29  ;;  %384 = vrot.lane.b32.xlu0 %v1656_v45, %s1458_s9  ;;  %s2073_s29 = smov 32   ;;  %s998_s9 = sshll.u32 %s1519_s25, 7 }
 0x11a   : > { %s2021_s17 = scalar_lea.hbm %s2069_s6, %s998_s9 }
 0x11d   : > { %393 = vrot.lane.b32.xlu1 %v1656_v45, %s1459_s13  ;;  %390 = vrot.lane.b32.xlu0 %v1656_v45, %s1460_s14 }
 0x121   : > { %396 = vrot.lane.b32.xlu0 %v1656_v45, %s1461_s16 }
 0x125   : > { %434 = vrot.lane.b32.xlu0 %v1617_v26, %s1461_s16 }
 0x177   : > { %v361_v16 = vpop.permute.xlu1 %360  ;;  %v355_v17 = vpop.permute.xlu0 %354 }
 0x178   : > { %v400_v18 = vsel %vm399_vm1, %v1656_v45, %v355_v17  ;;  %v509_v17 = vld [vmem:[%s2066_s3 + $0x1b8] sm:$0xff] }
 0x17b   : > { %v364_v19 = vpop.permute.xlu1 %363  ;;  %v358_v20 = vpop.permute.xlu0 %357 }
 0x17c   : > { %v402_v21 = vsel %vm401_vm2, %v400_v18, %v358_v20  ;;  %v493_v20 = vld [vmem:[%s2066_s3 + $0x138] sm:$0xff] }
 0x17d   : > { %v404_v22 = vsel %vm403_vm3, %v402_v21, %v361_v16  ;;  %v508_v16 = vld [vmem:[%s2066_s3 + $0x1b0] sm:$0xff] }
 0x17e   : > { %v406_v23 = vsel %vm405_vm4, %v404_v22, %v364_v19  ;;  %v1266_v18 = vpack.c.bf16 %v509_v17, %v508_v16  ;;  %v492_v19 = vld [vmem:[%s2066_s3 + $0x130] sm:$0xff] }
 0x17f   : > { %v370_v24 = vpop.permute.xlu1 %369  ;;  %v367_v25 = vpop.permute.xlu0 %366  ;;  %v1268_v21 = vpack.c.bf16 %v493_v20, %v492_v19  ;;  %v524_v22 = vld [vmem:[%s2066_s3 + $0x230] sm:$0xff] }
 0x180   : > { %v408_v27 = vsel %vm407_vm5, %v406_v23, %v367_v25  ;;  %v525_v23 = vld [vmem:[%s2066_s3 + $0x238] sm:$0xff]  ;;  %v510_v25 = vld [vmem:[%s2066_s3 + $0x1c0] sm:$0xff] }
 0x181   : > { %v410_v29 = vsel %vm409_vm6, %v408_v27, %v370_v24  ;;  %v1296_v24 = vpack.c.bf16 %v525_v23, %v524_v22  ;;  %v511_v27 = vld [vmem:[%s2066_s3 + $0x1c8] sm:$0xff] }
 0x183   : > { %v376_v28 = vpop.permute.xlu1 %375  ;;  %v373_v30 = vpop.permute.xlu0 %372  ;;  %1297 = vmatpush3.bf16.msra.mxu1 %v1296_v24 }
 0x184   : > { %v412_v31 = vsel %vm411_vm7, %v410_v29, %v373_v30  ;;  %v494_v29 = vld [vmem:[%s2066_s3 + $0x140] sm:$0xff]  ;;  %v495_v30 = vld [vmem:[%s2066_s3 + $0x148] sm:$0xff]  ;;  %1298 = vmatprep.subr.bf16.mxu1 %v1444_v3 }
 0x185   : > { %v414_v33 = vsel %vm413_vm8, %v412_v31, %v376_v28  ;;  %v1270_v28 = vpack.c.bf16 %v511_v27, %v510_v25  ;;  %v526_v31 = vld [vmem:[%s2066_s3 + $0x240] sm:$0xff] }
 0x186   : > { %v799_v27 = vld [vmem:[%s2067_s4] sm:$0xff] }
 0x187   : > { %v382_v32 = vpop.permute.xlu1 %381  ;;  %v379_v34 = vpop.permute.xlu0 %378 }
 0x188   : > { %v416_v35 = vsel %vm415_vm9, %v414_v33, %v379_v34  ;;  %v527_v33 = vld [vmem:[%s2066_s3 + $0x248] sm:$0xff]  ;;  %v512_v34 = vld [vmem:[%s2066_s3 + $0x1d0] sm:$0xff] }
 0x189   : > { %v418_v37 = vsel %vm417_vm10, %v416_v35, %v382_v32  ;;  %v1272_v32 = vpack.c.bf16 %v495_v30, %v494_v29  ;;  %v513_v35 = vld [vmem:[%s2066_s3 + $0x1d8] sm:$0xff]  ;;  %v801_v30 = vld [vmem:[%s2067_s4 + $0x10] sm:$0xff] }
 0x18b   : > { %v388_v36 = vpop.permute.xlu1 %387  ;;  %v385_v38 = vpop.permute.xlu0 %384 }
 0x18c   : > { %v420_v39 = vsel %vm419_vm11, %v418_v37, %v385_v38  ;;  %v1274_v37 = vpack.c.bf16 %v513_v35, %v512_v34  ;;  %v496_v38 = vld [vmem:[%s2066_s3 + $0x150] sm:$0xff]  ;;  %v803_v35 = vld [vmem:[%s2067_s4 + $0x20] sm:$0xff] }
 0x18d   : > { %v422_v42 = vsel %vm421_vm12, %v420_v39, %v388_v36  ;;  %v1299_v36 = vpack.c.bf16 %v527_v33, %v526_v31  ;;  %v497_v39 = vld [vmem:[%s2066_s3 + $0x158] sm:$0xff] }
 0x18e   : > { %v1276_v41 = vpack.c.bf16 %v497_v39, %v496_v38  ;;  %v802_v31 = vld [vmem:[%s2067_s4 + $0x18] sm:$0xff]  ;;  %v805_v39 = vld [vmem:[%s2067_s4 + $0x30] sm:$0xff] }
 0x18f   : > { %v391_v43 = vpop.permute.xlu0 %390  ;;  %v394_v48 = vpop.permute.xlu1 %393  ;;  %1300 = vmatpush3.bf16.msra.mxu1 %v1299_v36  ;;  %v816_v33 = vpack.c.bf16 %v802_v31, %v801_v30  ;;  %v804_v36 = vld [vmem:[%s2067_s4 + $0x28] sm:$0xff] }
 0x190   : > { %v424_v49 = vsel %vm423_vm13, %v422_v42, %v391_v43  ;;  %v529_v42 = vld [vmem:[%s2066_s3 + $0x258] sm:$0xff]  ;;  %v514_v43 = vld [vmem:[%s2066_s3 + $0x1e0] sm:$0xff]  ;;  %1301 = vmatprep.subr.bf16.mxu1 %v1444_v3 }
 0x191   : > { %v426_v54 = vsel %vm425_vm14, %v424_v49, %v394_v48  ;;  %v1278_v46 = vpack.c.bf16 %v515_v44, %v514_v43  ;;  %v499_v48 = vld [vmem:[%s2066_s3 + $0x168] sm:$0xff]  ;;  %v1302_v49 = vpack.c.bf16 %v529_v42, %v528_v40  ;;  %v837_v34 = vsel %vm415_vm9, %v816_v33, 0  ;;  %v806_v40 = vld [vmem:[%s2067_s4 + $0x38] sm:$0xff]  ;;  %v807_v43 = vld [vmem:[%s2067_s4 + $0x40] sm:$0xff] }
 0x192   : > { %v808_v44 = vld [vmem:[%s2067_s4 + $0x48] sm:$0xff] }
 0x193   : > { %v397_v55 = vpop.permute.xlu0 %396  ;;  %1303 = vmatpush3.bf16.msra.mxu1 %v1302_v49  ;;  %v809_v49 = vld [vmem:[%s2067_s4 + $0x50] sm:$0xff] }
 0x194   : > { %v428_v58 = vsel %vm427_vm15, %v426_v54, %v397_v55  ;;  %v1280_v54 = vpack.c.bf16 %v499_v48, %v498_v47  ;;  %v1282_v55 = vpack.c.bf16 %v517_v51, %v516_v50  ;;  %1304 = vmatprep.subr.bf16.mxu1 %v1444_v3  ;;  %v810_v50 = vld [vmem:[%s2067_s4 + $0x58] sm:$0xff] }
 0x195   : > { %v1775_v59 = vsub.f32 %v1617_v26, %v428_v58  ;;  %v501_v58 = vld [vmem:[%s2066_s3 + $0x178] sm:$0xff]  ;;  %v820_v51 = vpack.c.bf16 %v810_v50, %v809_v49 }
 0x196   : > { %v1284_v60 = vpack.c.bf16 %v501_v58, %v500_v57 }
 0x197   : > { %442 = vrot.lane.b32.xlu1 %v1775_v59, %s1461_s16  ;;  %v1787_v63 = vmul.f32 %v1775_v59, %v1775_v59  ;;  %1306 = vmatpush3.bf16.msra.mxu1 %v1305_v56 }
 0x198   : > { %1178 = vmatprep.subr.bf16.mxu1 %v1446_v6 }
 0x199   : > { %v431_v2 = vmul.f32 %v1787_v63, %v1775_v59 }
 0x19b   : > { %598 = vmatprep.mubr.f32.mxu0 %v431_v2 }
 0x19c   : > { %599 = vmatmul.mubr.f32.vlgmr.msra.gmra.mrb[2].mxu0 %v1787_v63 }
 0x19d   : > { %1257 = vmatpush3.bf16.msra.mxu0 %v1256_v4  ;;  %v435_v4 = vpop.permute.xlu0 %434 }
 0x19e   : > { %1259 = vmatprep.subr.bf16.mxu0 %v1258_v5  ;;  %v437_v5 = vmul.f32 %v435_v4, %v1617_v26 }
 0x1a0   : > { %vm438_vm6 = vcmp.lt.f32.partialorder %v437_v5, 0.0 }
 0x1a1   : > { %1261 = vmatpush3.bf16.msra.mxu0 %v1260_v11  ;;  %v991_v7 = vsel %vm438_vm6, 1.0, %v1446_v6 }
 0x1a2   : > { %1263 = vmatprep.subr.bf16.mxu0 %v1262_v12 }
 0x1a5   : > { %1265 = vmatpush3.bf16.msra.mxu0 %v1264_v15 }
 0x1a6   : > { %1267 = vmatprep.subr.bf16.mxu0 %v1266_v18 }
 0x1a9   : > { %1269 = vmatpush3.bf16.msra.mxu0 %v1268_v21 }
 0x1aa   : > { %1271 = vmatprep.subr.bf16.mxu0 %v1270_v28  ;;  %v800_v28 = vld [vmem:[%s2067_s4 + $0x8] sm:$0xff] }
 0x1ab   : > { %v815_v29 = vpack.c.bf16 %v800_v28, %v799_v27 }
 0x1ad   : > { %1273 = vmatpush3.bf16.msra.mxu0 %v1272_v32  ;;  %v834_v32 = vsel %vm415_vm9, %v815_v29, 0 }
 0x1ae   : > { %1275 = vmatprep.subr.bf16.mxu0 %v1274_v37  ;;  %v817_v37 = vpack.c.bf16 %v804_v36, %v803_v35 }
 0x1b0   : > { %v840_v38 = vsel %vm415_vm9, %v817_v37, 0 }
 0x1b1   : > { %1277 = vmatpush3.bf16.msra.mxu0 %v1276_v41  ;;  %v818_v41 = vpack.c.bf16 %v806_v40, %v805_v39 }
 0x1b2   : > { %1279 = vmatprep.subr.bf16.mxu0 %v1278_v46  ;;  %v819_v46 = vpack.c.bf16 %v808_v44, %v807_v43 }
 0x1b3   : > { %v843_v42 = vsel %vm415_vm9, %v818_v41, 0 }
 0x1b4   : > { %v846_v47 = vsel %vm415_vm9, %v819_v46, 0 }
 0x1b5   : > { %1281 = vmatpush3.bf16.msra.mxu0 %v1280_v54  ;;  %v849_v54 = vsel %vm415_vm9, %v820_v51, 0 }
 0x1b6   : > { %1283 = vmatprep.subr.bf16.mxu0 %v1282_v55  ;;  %v821_v55 = vpack.c.bf16 %v812_v53, %v811_v52 }
 0x1b8   : > { %v852_v57 = vsel %vm415_vm9, %v821_v55, 0 }
 0x1b9   : > { %1285 = vmatpush3.bf16.msra.mxu0 %v1284_v60 }
 0x209   : > { %v443_v61 = vpop.permute.xlu1 %442 }
 0x20a   : > { %v445_v62 = vmul.f32 %v443_v61, %v1775_v59  ;;  %v432_v59 = vmul.f32 %v1787_v63, %v1787_v63 }
 0x20c   : > { %vm446_vm5 = vcmp.lt.f32.partialorder %v445_v62, 0.0  ;;  %v813_v62 = vld [vmem:[%s2067_s4 + $0x70] sm:$0xff] }
 0x20d   : > { %v992_v3 = vsel %vm446_vm5, 1.0, %v1446_v6 }
 0x20e   : > { %450 = vrot.lane.b32.xlu1 %v992_v3, %s1461_s16  ;;  %v814_v3 = vld [vmem:[%s2067_s4 + $0x78] sm:$0xff] }
 0x26f   : > { %v1050_v0 = vpop.f32.mrb[2].mxu0 }
 0x270   : > { %v1051_v1 = vpop.f32.mrb[3].mxu0 }
 0x271   : > { %v1052_v2 = vadd.f32 %v1051_v1, %v1050_v0  ;;  %v822_v0 = vpack.c.bf16 %v814_v3, %v813_v62 }
 0x273   : > { %v855_v1 = vsel %vm415_vm9, %v822_v0, 0 }
 0x280   : > { %v451_v8 = vpop.permute.xlu1 %450 }
 0x281   : > { %1176 = vmatmul.mubr.msk.f32.vlgmr.msra.gmra.mrb[0].mxu1 %vm425_vm14, %v451_v8  ;;  %v453_v9 = vsel %vm427_vm15, %v991_v7, %v451_v8  ;;  %v771_v7 = vld [vmem:[%s263_s26] sm:$0xff]  ;;  %s1386_s26 = scalar_lea.vmem %s1385_s20, 256 }
 0x282   : > { %668 = vmatprep.mubr.f32.mxu0 %v453_v9  ;;  %1194 = vmatprep.mubr.msk.bf16.mxu1 %vm1445_vm0, %v1446_v6 }
 0x283   : > { %669 = vmatmul.mubr.f32.vlgmr.msra.gmra.mrb[4].mxu0 %v432_v59  ;;  %1179 = vmatpush3.bf16.xpose.msra.mxu1 %v834_v32 }
 0x284   : > { %1180 = vmatprep.subr.bf16.mxu1 %v1446_v6 }
 0x28b   : > { %1181 = vmatpush3.bf16.xpose.msra.mxu1 %v837_v34 }
 0x28c   : > { %1182 = vmatprep.subr.bf16.mxu1 %v1446_v6 }
 0x293   : > { %1183 = vmatpush3.bf16.xpose.msra.mxu1 %v840_v38 }
 0x294   : > { %1184 = vmatprep.subr.bf16.mxu1 %v1446_v6 }
 0x29b   : > { %1185 = vmatpush3.bf16.xpose.msra.mxu1 %v843_v42 }
 0x29c   : > { %1186 = vmatprep.subr.bf16.mxu1 %v1446_v6 }
 0x2a3   : > { %1187 = vmatpush3.bf16.xpose.msra.mxu1 %v846_v47 }
 0x2a4   : > { %1188 = vmatprep.subr.bf16.mxu1 %v1446_v6 }
 0x2ab   : > { %1189 = vmatpush3.bf16.xpose.msra.mxu1 %v849_v54 }
 0x2ac   : > { %1190 = vmatprep.subr.bf16.mxu1 %v1446_v6 }
 0x2b3   : > { %1191 = vmatpush3.bf16.xpose.msra.mxu1 %v852_v57 }
 0x2b4   : > { %1192 = vmatprep.subr.bf16.mxu1 %v1446_v6 }
 0x2bb   : > { %1193 = vmatpush3.bf16.xpose.msra.mxu1 %v855_v1 }
 0x354   : > { %v740_v10 = vpop.f32.mrb[0].mxu1 }
 0x355   : > { %v1177_v11 = vpop.f32.mrb[1].mxu1 }
 0x356   : > { %v1085_v12 = vpop.f32.mrb[4].mxu0 }
 0x357   : > { %v1086_v26 = vpop.f32.mrb[5].mxu0 }
 0x358   : > { %v1087_v13 = vadd.f32 %v1086_v26, %v1085_v12 }
 0x35a   : > { %v671_v14 = vadd.f32 %v1087_v13, %v1052_v2 }
 0x35c   : > { %v1917_v15 = vadd.f32 %v740_v10, %v671_v14 }
 0x35e   : > { %v1920_v16 = vmul.f32 0.0625, %v1917_v15  ;;  %v745_v5 = vmul.f32 0.06666667, %v1917_v15 }
 0x360   : > { %v746_v17 = vadd.f32 1e-06, %v1920_v16  ;;  %v1369_v8 = vpack.i.bf16 %v745_v5, %v771_v7 }
 0x362   : > { %v763_v18 = vmul.f32 %v746_v17, %v746_v17  ;;  %1374 = vrsqrt.f32 %v746_v17  ;;  %vm749_vm0 = vcmp.eq.f32.partialorder %v746_v17, inf  ;;  %v752_v20 = vand.u32 2147483648, %v746_v17 }
 0x363   : > { %vm751_vm10 = vcmp.eq.f32.partialorder %v746_v17, 0.0 }
 0x364   : > { %765 = vrot.lane.b32.xlu0 %v763_v18, %s1450_s11  ;;  %s255_s11 = scalar_lea.vmem [#allocation2], %s988_s12 }
 0x365   : > { %s913_s13 = sshll.u32 %s255_s11, 4  ;;  %s2023_s13 = int_to_ptr.vmem [resolvable:$true] %s913_s13 }
 0x366   : > { %s1380_s25 = scalar_lea.vmem %s2023_s13, 128  ;;  %p1387_p0 = scmp.lt.s32.totalorder %s2023_s13, %s1385_s20 }
 0x367   : > { %p1381_p11 = scmp.ne.s32.totalorder %s2023_s13, %s1380_s25  ;;  %p1388_p1 = scmp.lt.s32.totalorder %s1386_s26, %s1380_s25 }
 0x369   : > { %p1382_p12 = pnand %p1381_p11, %p1536_p5  ;;  %p1389_p2 = por %p1388_p1, %p1387_p0 }
 0x36b   : > { %p1383_p13 = pneg %p1382_p12 }
 0x36c   : > { %v1375_v63 = vpop.eup %1374 }
 0x36d   : > { %v748_v19 = vmul.f32 %v1375_v63, %v746_v17  ;;  %p1390_p3 = pnand %p1389_p2, %p1383_p13 }
 0x36f   : > { %v750_v21 = vsel %vm749_vm0, %v746_v17, %v748_v19 }
 0x370   : > { %v1924_v22 = vsel %vm751_vm10, %v752_v20, %v750_v21 }
 0x371   : > { %v754_v23 = vmul.f32 %v1924_v22, %v1924_v22 }
 0x373   : > { %v755_v24 = vmul.f32 %v754_v23, %v1924_v22 }
 0x375   : > { %v756_v25 = vadd.f32 1e-06, %v755_v24 }
 0x377   : > { %758 = vrot.lane.b32.xlu1 %v756_v25, %s1448_s15 }
 0x3d6   : > { %v766_v48 = vpop.permute.xlu0 %765 }
 0x3d7   : > { %1376 = vrcp.f32 %v766_v48 }
 0x3e1   : > { %v1377_v56 = vpop.eup %1376 }
 0x3e2   : > { %v769_v58 = vmul.f32 %v1377_v56, %v1920_v16 }
 0x3e4   : > { %v994_v60 = vadd.f32 -3.0, %v769_v58 }
 0x3e6   : > { %781 = vrot.lane.b32.xlu1 %v994_v60, %s1448_s15 }
 0x3e9   : > { %v759_v61 = vpop.permute.xlu1 %758 }
 0x3ea   : > { %1378 = vrcp.f32 %v759_v61 }
 0x3f4   : > { %v1379_v2 = vpop.eup %1378 }
 0x3f5   : > { %v762_v4 = vmul.f32 %v1379_v2, %v1920_v16 }
 0x3f7   : > { %v1364_v6 = vpack.i.bf16 %v762_v4, %v1924_v22 }
 0x3f9   : > { %1365 = vrot.lane.b32.xlu0 %v1364_v6, %s1448_s15 }
 0x3fd   : > { %1370 = vrot.lane.b32.xlu0 %v1369_v8, %s2073_s29 }
 0x458   : > { %v782_v12 = vpop.permute.xlu1 %781 }
 0x46b   : > { %v1366_v9 = vpop.permute.xlu0 %1365 }
 0x46c   : > { %v1368_v59 = vunpack.i.h.bf16 %v1366_v9  ;;  %v1367_v10 = vunpack.i.l.bf16 %v1366_v9 }
 0x46e   : > { %v792_v11 = vsel %vm399_vm1, %v1656_v45, %v1367_v10  ;;  %v995_v45 = vld [vmem:[%s2068_s5] ss:$0 sm:$0xff] }
 0x46f   : > { %v793_v26 = vsel %vm401_vm2, %v792_v11, %v1368_v59  ;;  %v1371_v13 = vpop.permute.xlu0 %1370 }
 0x470   : > { %v1373_v14 = vunpack.i.h.bf16 %v1371_v13  ;;  %v1372_v15 = vunpack.i.l.bf16 %v1371_v13  ;;  %v794_v16 = vsel %vm403_vm3, %v793_v26, %v782_v12 }
 0x472   : > { %v795_v17 = vsel %vm405_vm4, %v794_v16, %v1372_v15 }
 0x473   : > { %v796_v18 = vsel %vm411_vm7, %v795_v17, %v1373_v14 }
 0x474   : > { %v797_v63 = vsel %vm413_vm8, %v796_v18, %v1373_v14 }
 0x475   : > { %v798_v19 = vpack.c.bf16 %v797_v63, %v797_v63 }
 0x477   : > { %1195 = vmatmul.mubr.msk.bf16.vlgmr.msra.gmra.mrb[4].mxu1 %vm415_vm9, %v798_v19 }
 0x54a   : > { %v891_v20 = vpop.f32.mrb[4].mxu1 }
 0x54b   : > { %v892_v21 = vadd.f32 %v995_v45, %v891_v20  ;;  %v1196_v22 = vpop.f32.mrb[5].mxu1 }
 0x54c   : > { %v894_v23 = vpop.f32.mrb[6].mxu1 }
 0x54d   : > { %v897_v24 = vmax.f32 %v892_v21, 0.0  ;;  %v1197_v25 = vpop.f32.mrb[7].mxu1 }
 0x54f   : > { %898 = vst [vmem:[%s255_s11] sm:$0xff] %v897_v24 }
 0x550   : > { %1393 = shalt.err (!%p1390_p3)
}
 0x551   : > { %s1394_s29 = scalar_lea.hbm %s2021_s17, 128  ;;  %s1398_s15 = scalar_lea.hbm %s2069_s6, 256 }
 0x552   : > { %p1395_p4 = scmp.ne.s32.totalorder %s2021_s17, %s1394_s29  ;;  %p1399_p9 = scmp.lt.u32.totalorder %s2021_s17, %s2069_s6 }
 0x553   : > { %p1400_p10 = scmp.lt.u32.totalorder %s1398_s15, %s1394_s29  ;;  %p1402_p12 = scmp.lt.u32.totalorder %s1394_s29, %s2021_s17 }
 0x554   : > { %p1396_p7 = pnand %p1395_p4, %p1536_p5 }
 0x555   : > { %p1401_p11 = por %p1400_p10, %p1399_p9 }
 0x556   : > { %p1397_p8 = pneg %p1396_p7 }
 0x557   : > { %p1403_p13 = por %p1402_p12, %p1401_p11 }
 0x559   : > { %p1404_p0 = pnand %p1403_p13, %p1397_p8 }
 0x55b   : > { %1407 = shalt.err (!%p1404_p0)
}
 0x55c   : > { %1307 = dma.vmem_to_hbm [thread:$0]  (%p1536_p5), %s2023_s13, 128, %s2021_s17, %s900_s18  }
 0x55d PF: > { %p1313_p1 = scmp.ge.s32.totalorder %s1442_s24, 2  ;;  %s925_s11 = sand.u32 1, %s1430_s21  }
 0x55e   : > { %s926_s10 = scalar_lea.sflag [#allocation3], %s925_s11 }
 0x55f   : > { %p1310_p2 = pnand %p1313_p1, %p1540_p6 }
 0x561   : > { %1425 = dma.done.wait (!%p1310_p2), %s926_s10, 128  }
 0x562   : > { %1427 = vsyncadd (!%p1310_p2), %s926_s10, 4294967168  ;;  %p16_p3 = scmp.ge.s32.totalorder %s1523_s27, 4   ;;  %s2074_s21 = smov %s1434_s22 }
 0x563   : > { %s2075_s22 = smov %s1438_s23  ;;  %s2076_s23 = smov %s1534_s30 }
 0x564   : > { %s2077_s24 = smov %s1523_s27  ;;  %18 = sbr.rel (!%p16_p3) target bundleno = 3 (0x3), region = 82 }
 0x56b   :  { %931 = vsyncpa [#allocation3], 1 }
 0x56c   :  { %933 = vsyncpa [#allocation3 + $0x1], 1 }

</bundles_post_ra>
